<compile_context>
chip_gen: v6e
topology: v6e:2x2x1
jax: 0.10.0
libtpu: 0.0.40
codegen_flags: <defaults>
</compile_context>

<pallas_src>
import jax
import jax.numpy as jnp
from jax.experimental import pallas as pl
from jax.experimental.pallas import tpu as pltpu

LANE = 128


def mlp_kernel(x_ref, w1_ref, b1_ref, w2_ref, b2_ref, o_ref):
    x = x_ref[...]                      # (TB, F), F tiny (2)
    n_feature = x_ref.shape[1]
    n_output = o_ref.shape[1]

    # ---- Layer 1 on the VPU: statically unrolled broadcast multiply-adds
    #      (K = n_feature is far too small to be worth an MXU pass).
    acc = x[:, 0:1] * w1_ref[0:1, :]                        # (TB,1)*(1,HP) -> (TB,HP)
    for f in range(1, n_feature):                           # static unroll, F small
        acc = acc + x[:, f:f + 1] * w1_ref[f:f + 1, :]
    h = jnp.maximum(acc + b1_ref[...], jnp.float32(0.0))    # ReLU on the VPU

    # ---- Layer 2 on the MXU: K=HP=128, N=OP=128 -> full lane-dense tile.
    o = jnp.dot(h, w2_ref[...], preferred_element_type=jnp.float32)
    o = o + b2_ref[...]

    # Store only the real logits: (TB, n_output). Masked vst into the narrow
    # block is a few cycles per 8 rows and hides under DMA; saves ~64x HBM bytes.
    o_ref[...] = o[:, :n_output].astype(o_ref.dtype)


def _round_up(n, m):
    return ((n + m - 1) // m) * m


def pad_params(w1, b1, w2, b2):
    """Pad weights/biases to lane-dense shapes ONCE (outside the per-call path).

    w1: (F, H); b1: (1, H); w2: (H, O); b2: (1, O)  — [in, out] layout.
    Padding is exact: extra hidden units contribute relu(0)=0 through zero w2 rows,
    and extra output lanes are discarded by the kernel's narrow store.
    """
    F, H = w1.shape
    O = w2.shape[1]
    HP = _round_up(H, LANE)
    OP = _round_up(O, LANE)
    w1_p = jnp.zeros((F, HP), jnp.float32).at[:, :H].set(w1)
    b1_p = jnp.zeros((1, HP), jnp.float32).at[:, :H].set(b1)
    w2_p = jnp.zeros((HP, OP), jnp.float32).at[:H, :O].set(w2)
    b2_p = jnp.zeros((1, OP), jnp.float32).at[:, :O].set(b2)
    return w1_p, b1_p, w2_p, b2_p


def net_forward(x, w1_p, b1_p, w2_p, b2_p, n_output, *, batch_tile=2048):
    """x: (B, F) f32; padded params from pad_params(); returns (B, n_output)."""
    B, F = x.shape
    HP = w1_p.shape[1]
    OP = w2_p.shape[1]
    O = n_output

    # Batch tile: multiple of 8 sublanes, capped at batch_tile, and chosen so the
    # grid has >= 2 steps (keeps both v7x TensorCores busy) whenever B >= 16.
    TB = min(batch_tile, _round_up(max(8, -(-B // 2)), 8))
    B_pad = _round_up(B, TB)

    # Only materialize a padded activation copy when strictly required.
    if B_pad != B:
        x_in = jnp.zeros((B_pad, F), jnp.float32).at[:B, :].set(x)
    else:
        x_in = x

    cost = pl.CostEstimate(
        flops=2 * B_pad * (F * HP + HP * OP),
        transcendentals=0,
        bytes_accessed=4 * (B_pad * F + F * HP + HP + HP * OP + OP + B_pad * O),
    )

    out = pl.pallas_call(
        mlp_kernel,
        out_shape=jax.ShapeDtypeStruct((B_pad, O), jnp.float32),
        grid_spec=pltpu.PrefetchScalarGridSpec(
            num_scalar_prefetch=0,
            grid=(B_pad // TB,),
            in_specs=[
                pl.BlockSpec((TB, F), lambda i: (i, 0)),     # activations: tiled over batch
                pl.BlockSpec((F, HP), lambda i: (0, 0)),     # weights/biases: VMEM-resident
                pl.BlockSpec((1, HP), lambda i: (0, 0)),
                pl.BlockSpec((HP, OP), lambda i: (0, 0)),
                pl.BlockSpec((1, OP), lambda i: (0, 0)),
            ],
            # Narrow, unpadded output block: O equals the full last dim, so this is
            # legal and writes only 4*O bytes per row back to HBM.
            out_specs=pl.BlockSpec((TB, O), lambda i: (i, 0)),
        ),
        compiler_params=pltpu.CompilerParams(
            dimension_semantics=("parallel",),               # batch tiles across TCs
        ),
        cost_estimate=cost,
    )(x_in, w1_p, b1_p, w2_p, b2_p)

    return out if B_pad == B else out[:B, :]


def init_linear_params(key, fan_in, fan_out):
    """Mimics torch.nn.Linear default init: U(-1/sqrt(fan_in), 1/sqrt(fan_in))."""
    kw, kb = jax.random.split(key)
    bound = 1.0 / jnp.sqrt(jnp.float32(fan_in))
    # stored as [in, out] so forward is x @ W (== x @ weight.T in PyTorch terms)
    w = jax.random.uniform(kw, (fan_in, fan_out), jnp.float32, -bound, bound)
    b = jax.random.uniform(kb, (1, fan_out), jnp.float32, -bound, bound)
    return w, b


if __name__ == "__main__":
    # Shapes implied by the module's usage: 2 input features (2-D point cloud),
    # a small hidden layer, 2 output logits (binary classification).
    batch, n_feature, n_hidden, n_output = 16, 2, 32, 2

    key = jax.random.PRNGKey(0)
    k_x, k_l1, k_l2 = jax.random.split(key, 3)

    # synthetic inputs resembling the two Gaussian clusters in the original script
    x0 = 2.0 + jax.random.normal(k_x, (batch // 2, n_feature), jnp.float32)
    x1 = -2.0 + jax.random.normal(jax.random.fold_in(k_x, 1),
                                  (batch // 2, n_feature), jnp.float32)
    x = jnp.concatenate([x0, x1], axis=0).astype(jnp.float32)

    w1, b1 = init_linear_params(k_l1, n_feature, n_hidden)
    w2, b2 = init_linear_params(k_l2, n_hidden, n_output)

    # Pad the static parameters once, outside the per-call path.
    w1_p, b1_p, w2_p, b2_p = pad_params(w1, b1, w2, b2)

    out = net_forward(x, w1_p, b1_p, w2_p, b2_p, n_output)
    out = jax.block_until_ready(out)

    # reference check in plain JAX
    ref = jnp.maximum(x @ w1 + b1, 0.0) @ w2 + b2
    assert out.shape == (batch, n_output)
    assert jnp.allclose(out, ref, atol=1e-5, rtol=1e-5)

    print("KERNEL_OK")
</pallas_src>

<mosaic_0001>
module attributes {stable_mosaic.version = 11 : i64} {
  func.func @mlp_kernel(%arg0: i32, %arg1: memref<8x2xf32, #tpu.memory_space<vmem>>, %arg2: memref<2x128xf32, #tpu.memory_space<vmem>>, %arg3: memref<1x128xf32, #tpu.memory_space<vmem>>, %arg4: memref<128x128xf32, #tpu.memory_space<vmem>>, %arg5: memref<1x128xf32, #tpu.memory_space<vmem>>, %arg6: memref<8x2xf32, #tpu.memory_space<vmem>>) attributes {dimension_semantics = [#tpu.dimension_semantics<parallel>], iteration_bounds = array<i64: 2>, scalar_prefetch = 0 : i64, scratch_operands = 0 : i64, tpu.core_type = #tpu.core_type<tc>, window_params = [{transform_indices = @transform_0, window_bounds = array<i64: 8, 2>}, {pipeline_mode = #tpu.pipeline_mode<synchronous>, transform_indices = @transform_1, window_bounds = array<i64: 2, 128>}, {pipeline_mode = #tpu.pipeline_mode<synchronous>, transform_indices = @transform_2, window_bounds = array<i64: 1, 128>}, {pipeline_mode = #tpu.pipeline_mode<synchronous>, transform_indices = @transform_3, window_bounds = array<i64: 128, 128>}, {pipeline_mode = #tpu.pipeline_mode<synchronous>, transform_indices = @transform_4, window_bounds = array<i64: 1, 128>}, {transform_indices = @transform_5, window_bounds = array<i64: 8, 2>}]} {
    %c0 = arith.constant 0 : index
    %c0_0 = arith.constant 0 : index
    %0 = vector.load %arg1[%c0, %c0_0] : memref<8x2xf32, #tpu.memory_space<vmem>>, vector<8x2xf32>
    %1 = vector.extract_strided_slice %0 {offsets = [0, 0], sizes = [8, 1], strides = [1, 1]} : vector<8x2xf32> to vector<8x1xf32>
    %c0_1 = arith.constant 0 : index
    %c0_2 = arith.constant 0 : index
    %2 = vector.load %arg2[%c0_1, %c0_2] : memref<2x128xf32, #tpu.memory_space<vmem>>, vector<1x128xf32>
    %3 = vector.broadcast %1 : vector<8x1xf32> to vector<8x128xf32>
    %4 = vector.broadcast %2 : vector<1x128xf32> to vector<8x128xf32>
    %5 = arith.mulf %3, %4 : vector<8x128xf32>
    %6 = vector.extract_strided_slice %0 {offsets = [0, 1], sizes = [8, 1], strides = [1, 1]} : vector<8x2xf32> to vector<8x1xf32>
    %c1 = arith.constant 1 : index
    %c0_3 = arith.constant 0 : index
    %7 = vector.load %arg2[%c1, %c0_3] : memref<2x128xf32, #tpu.memory_space<vmem>>, vector<1x128xf32>
    %8 = vector.broadcast %6 : vector<8x1xf32> to vector<8x128xf32>
    %9 = vector.broadcast %7 : vector<1x128xf32> to vector<8x128xf32>
    %10 = arith.mulf %8, %9 : vector<8x128xf32>
    %11 = arith.addf %5, %10 : vector<8x128xf32>
    %c0_4 = arith.constant 0 : index
    %c0_5 = arith.constant 0 : index
    %12 = vector.load %arg3[%c0_4, %c0_5] : memref<1x128xf32, #tpu.memory_space<vmem>>, vector<1x128xf32>
    %13 = vector.broadcast %12 : vector<1x128xf32> to vector<8x128xf32>
    %14 = arith.addf %11, %13 : vector<8x128xf32>
    %cst = arith.constant 0.000000e+00 : f32
    %15 = vector.broadcast %cst : f32 to vector<8x128xf32>
    %16 = arith.maximumf %14, %15 : vector<8x128xf32>
    %c0_6 = arith.constant 0 : index
    %c0_7 = arith.constant 0 : index
    %17 = vector.load %arg4[%c0_6, %c0_7] : memref<128x128xf32, #tpu.memory_space<vmem>>, vector<128x128xf32>
    %cst_8 = arith.constant dense<0.000000e+00> : vector<8x128xf32>
    %18 = tpu.matmul %16, %17, %cst_8 {dimension_numbers = #tpu.dot_dimension_numbers<[1], [0], [0], [1], [0, 0, 1, 1], [], []>} : vector<8x128xf32>, vector<128x128xf32>, vector<8x128xf32> -> vector<8x128xf32>
    %c0_9 = arith.constant 0 : index
    %c0_10 = arith.constant 0 : index
    %19 = vector.load %arg5[%c0_9, %c0_10] : memref<1x128xf32, #tpu.memory_space<vmem>>, vector<1x128xf32>
    %20 = vector.broadcast %19 : vector<1x128xf32> to vector<8x128xf32>
    %21 = arith.addf %18, %20 : vector<8x128xf32>
    %22 = vector.extract_strided_slice %21 {offsets = [0, 0], sizes = [8, 2], strides = [1, 1]} : vector<8x128xf32> to vector<8x2xf32>
    %c0_11 = arith.constant 0 : index
    %c0_12 = arith.constant 0 : index
    %23 = vector.load %arg6[%c0_11, %c0_12] : memref<8x2xf32, #tpu.memory_space<vmem>>, vector<8x2xf32>
    tpu.vector_store %arg6[%c0_11, %c0_12], %22 {strides = array<i32>} : memref<8x2xf32, #tpu.memory_space<vmem>>, vector<8x2xf32>,
    return
  }
  func.func @transform_0(%arg0: i32) -> (i32, i32) {
    %c0_i32 = arith.constant 0 : i32
    %c0_i32_0 = arith.constant 0 : i32
    return %arg0, %c0_i32 : i32, i32
  }
  func.func @transform_1(%arg0: i32) -> (i32, i32) {
    %c0_i32 = arith.constant 0 : i32
    %c0_i32_0 = arith.constant 0 : i32
    %c0_i32_1 = arith.constant 0 : i32
    return %c0_i32, %c0_i32_0 : i32, i32
  }
  func.func @transform_2(%arg0: i32) -> (i32, i32) {
    %c0_i32 = arith.constant 0 : i32
    %c0_i32_0 = arith.constant 0 : i32
    %c0_i32_1 = arith.constant 0 : i32
    return %c0_i32, %c0_i32_0 : i32, i32
  }
  func.func @transform_3(%arg0: i32) -> (i32, i32) {
    %c0_i32 = arith.constant 0 : i32
    %c0_i32_0 = arith.constant 0 : i32
    %c0_i32_1 = arith.constant 0 : i32
    return %c0_i32, %c0_i32_0 : i32, i32
  }
  func.func @transform_4(%arg0: i32) -> (i32, i32) {
    %c0_i32 = arith.constant 0 : i32
    %c0_i32_0 = arith.constant 0 : i32
    %c0_i32_1 = arith.constant 0 : i32
    return %c0_i32, %c0_i32_0 : i32, i32
  }
  func.func @transform_5(%arg0: i32) -> (i32, i32) {
    %c0_i32 = arith.constant 0 : i32
    %c0_i32_0 = arith.constant 0 : i32
    return %arg0, %c0_i32 : i32, i32
  }
}

</mosaic_0001>

<bundles_post_ra>
// kernel: tpu_custom_call.1
= control target key start
LH: loop header
LB: loop body
LE: loop exit
PB: predicated region body
PF: predicated region fallthrough
CT: control target
= control target key end

     0   :  { %10 = vsyncpa [#allocation3], 0  ;;  %s596_s18 = smov 0   ;;  %s654_s0 = inlined_call_operand.vmem [shape: f32[16,2], index: 0, kind: input, shape index: {}]   ;;  %s655_s1 = inlined_call_operand.vmem [shape: f32[2,128], index: 1, kind: input, shape index: {}]   ;;  %s656_s2 = inlined_call_operand.vmem [shape: f32[1,128], index: 2, kind: input, shape index: {}]   ;;  %s657_s3 = inlined_call_operand.hbm [shape: f32[128,128], index: 3, kind: input, shape index: {}]   ;;  %s658_s4 = inlined_call_operand.vmem [shape: f32[1,128], index: 4, kind: input, shape index: {}]   ;;  %s659_s5 = inlined_call_operand.vmem [shape: f32[16,2], index: 5, kind: output, shape index: {}]  }
   0x1 LB: > { %s602_s19 = sadd.s32 4294967295, %s557_s18   ;;  %p429_p0 = scmp.ge.s32.totalorder %s557_s18, 1  ;;  %s557_s18 = sphi %s596_s18, %s16_s18  }
   0x2   : > { %p157_p1 = scmp.lt.s32.totalorder %s557_s18, 3  ;;  %s559_s20 = smov [#allocation2]  }
   0x3   : > { %s175_s21 = sshll.u32 %s559_s20, 4  ;;  %p502_p3 = scmp.eq.s32.totalorder %s602_s19, 0  ;;  %s176_s21 = int_to_ptr.vmem [resolvable:$true] %s175_s21 }
   0x4   : > { %p606_p2 = pnand %p429_p0, %p157_p1  ;;  %s532_s23 = scalar_lea.vmem %s176_s21, 2048 }
   0x5   : > { %p533_p7 = scmp.ne.s32.totalorder %s176_s21, %s532_s23  ;;  %p540_p10 = scmp.lt.s32.totalorder %s176_s21, %s176_s21 }
   0x6   : > { %p498_p4 = pneg %p606_p2  ;;  %p541_p11 = scmp.lt.s32.totalorder %s532_s23, %s532_s23 }
   0x8   : > { %p499_p5 = pnand %p502_p3, %p498_p4  ;;  %p542_p12 = por %p541_p11, %p540_p10 }
   0xa   : > { %p523_p6 = pneg %p499_p5 }
   0xc   : > { %p535_p8 = pnand %p533_p7, %p523_p6 }
   0xe   : > { %p536_p9 = pneg %p535_p8 }
  0x10   : > { %p543_p13 = pnand %p542_p12, %p536_p9 }
  0x12   : > { %546 = shalt.err (!%p543_p13)
}
  0x13   : > { %s560_s24 = smov 128   ;;  %s561_s25 = smov 8  }
  0x14   : > { %501 = dma.hbm_to_vmem [thread:$0]  (!%p499_p5), %s657_s3, 2048, %s176_s21, [#allocation3], %s560_s24, %s560_s24, %s561_s25  }
  0x15   : > { %201 = sbr.rel (%p606_p2) target bundleno = 366 (0x16e), region = 40 }
  0x1a   : > { %552 = dma.done.wait (%p502_p3), [#allocation3], 2048  }
  0x1b   : > { %554 = vsyncadd (%p502_p3), [#allocation3], 4294965248  ;;  %p227_p0 = scmp.lt.s32.totalorder %s602_s19, 1  ;;  %v562_v0 = vmov 0   ;;  %v563_v1 = vmov 0.0   ;;  %v282_v3 = vld [vmem:[#allocation2 + $0x78] sm:$0xff] }
  0x1c   : > { %519 = vset.pattern.permute.xlu0 %v562_v0  ;;  %459 = vmatprep.subr.mxu0 %v563_v1  ;;  %v281_v4 = vld [vmem:[#allocation2 + $0x70] sm:$0xff]  ;;  %v280_v5 = vld [vmem:[#allocation2 + $0x68] sm:$0xff]  ;;  %v279_v6 = vld [vmem:[#allocation2 + $0x60] sm:$0xff]  ;;  %v564_v7 = vmov 1   ;;  %vm565_vm0 = vmmov 0   ;;  %vm360_vm1 = vcmask 15360  }
  0x1d   : > { %s662_s19 = smov (!%p227_p0, %s602_s19), 1  ;;  %460 = vmatpush3.msra.mxu0 %v282_v3  ;;  %v278_v8 = vld [vmem:[#allocation2 + $0x58] sm:$0xff]  ;;  %491 = vmatprep.mubr.msk.f32.mxu0 %vm565_vm0, %v563_v1  ;;  %v277_v9 = vld [vmem:[#allocation2 + $0x50] sm:$0xff]  ;;  %v276_v10 = vld [vmem:[#allocation2 + $0x48] sm:$0xff] }
  0x1e   : > { %s434_s28 = sshll.u32 %s662_s19, 3  ;;  %461 = vmatprep.subr.mxu0 %v563_v1  ;;  %v275_v11 = vld [vmem:[#allocation2 + $0x40] sm:$0xff]  ;;  %v274_v12 = vld [vmem:[#allocation2 + $0x38] sm:$0xff]  ;;  %v273_v13 = vld [vmem:[#allocation2 + $0x30] sm:$0xff] }
  0x1f   : > { %s230_s6 = scalar_lea.vmem %s654_s0, %s434_s28  ;;  %462 = vmatpush3.msra.mxu0 %v281_v4  ;;  %v272_v14 = vld [vmem:[#allocation2 + $0x28] sm:$0xff]  ;;  %v271_v15 = vld [vmem:[#allocation2 + $0x20] sm:$0xff]  ;;  %v270_v16 = vld [vmem:[#allocation2 + $0x18] sm:$0xff]  ;;  %s234_s17 = scalar_lea.vmem %s659_s5, %s434_s28 }
  0x20   : > { %v235_v2 = vld [vmem:[%s230_s6] sm:$0xff]  ;;  %463 = vmatprep.subr.mxu0 %v563_v1  ;;  %v269_v17 = vld [vmem:[#allocation2 + $0x10] sm:$0xff]  ;;  %v268_v18 = vld [vmem:[#allocation2 + $0x8] sm:$0xff] }
  0x21   : > { %239 = vperm.xlu0 %519, %v235_v2   ;;  %464 = vmatpush3.msra.mxu0 %v280_v5  ;;  %v267_v19 = vld [vmem:[#allocation2] sm:$0xff] }
  0x22   : > { %465 = vmatprep.subr.mxu0 %v563_v1  ;;  %v436_v21 = vld [vmem:[%s655_s1] ss:$0 sm:$0xff]  ;;  %v437_v22 = vld [vmem:[%s655_s1 + $0x1] ss:$0 sm:$0xff] }
  0x23   : > { %466 = vmatpush3.msra.mxu0 %v279_v6  ;;  %v438_v26 = vld [vmem:[%s656_s2] ss:$0 sm:$0xff] }
  0x24   : > { %467 = vmatprep.subr.mxu0 %v563_v1  ;;  %v439_v30 = vld [vmem:[%s658_s4] ss:$0 sm:$0xff] }
  0x25   : > { %520 = vset.pattern.permute.xlu0 %v564_v7  ;;  %468 = vmatpush3.msra.mxu0 %v278_v8 }
  0x26   : > { %249 = vperm.xlu0 %520, %v235_v2   ;;  %469 = vmatprep.subr.mxu0 %v563_v1 }
  0x27   : > { %470 = vmatpush3.msra.mxu0 %v277_v9 }
  0x28   : > { %471 = vmatprep.subr.mxu0 %v563_v1 }
  0x29   : > { %472 = vmatpush3.msra.mxu0 %v276_v10 }
  0x2a   : > { %473 = vmatprep.subr.mxu0 %v563_v1 }
  0x2b   : > { %474 = vmatpush3.msra.mxu0 %v275_v11 }
  0x2c   : > { %475 = vmatprep.subr.mxu0 %v563_v1 }
  0x2d   : > { %476 = vmatpush3.msra.mxu0 %v274_v12 }
  0x2e   : > { %477 = vmatprep.subr.mxu0 %v563_v1 }
  0x2f   : > { %478 = vmatpush3.msra.mxu0 %v273_v13 }
  0x30   : > { %479 = vmatprep.subr.mxu0 %v563_v1 }
  0x31   : > { %480 = vmatpush3.msra.mxu0 %v272_v14 }
  0x32   : > { %481 = vmatprep.subr.mxu0 %v563_v1 }
  0x33   : > { %482 = vmatpush3.msra.mxu0 %v271_v15 }
  0x34   : > { %483 = vmatprep.subr.mxu0 %v563_v1 }
  0x35   : > { %484 = vmatpush3.msra.mxu0 %v270_v16 }
  0x36   : > { %485 = vmatprep.subr.mxu0 %v563_v1 }
  0x37   : > { %486 = vmatpush3.msra.mxu0 %v269_v17 }
  0x38   : > { %487 = vmatprep.subr.mxu0 %v563_v1 }
  0x39   : > { %488 = vmatpush3.msra.mxu0 %v268_v18 }
  0x3a   : > { %489 = vmatprep.subr.mxu0 %v563_v1 }
  0x3b   : > { %490 = vmatpush3.msra.mxu0 %v267_v19 }
  0x9c   : > { %v240_v20 = vpop.permute.xlu0 %239 }
  0x9d   : > { %v246_v24 = vmul.f32 %v436_v21, %v240_v20 }
  0xa1   : > { %v250_v23 = vpop.permute.xlu0 %249 }
  0xa2   : > { %v256_v25 = vmul.f32 %v437_v22, %v250_v23 }
  0xa4   : > { %v257_v27 = vadd.f32 %v256_v25, %v246_v24 }
  0xa6   : > { %v265_v28 = vadd.f32 %v438_v26, %v257_v27 }
  0xa8   : > { %v266_v29 = vmax.f32 %v265_v28, 0.0 }
  0xaa   : > { %492 = vmatmul.mubr.f32.vlgmr.msra.gmra.mxu0 %v266_v29 }
 0x16a   : > { %v356_v31 = vpop.f32.mrf.mxu0 }
 0x16b   : > { %v357_v32 = vadd.f32 %v439_v30, %v356_v31 }
 0x16c   : > { %v493_v33 = vpop.f32.mrf.mxu0 }
 0x16d   : > { %361 = vst.msk [vmem:[%s234_s17] sm:$0xff] %vm360_vm1, %v357_v32 }
 0x16e PF: > { %s16_s18 = sadd.s32 1, %s557_s18  }
 0x16f   : > { %p13_p1 = scmp.ge.s32.totalorder %s16_s18, 4  }
 0x171   :  { %15 = sbr.rel (!%p13_p1) target bundleno = 1 (0x1), region = 75 }
 0x176   :  { %381 = vsyncpa [#allocation3], 1 }
 0x177   :  { %383 = vsyncpa [#allocation3 + $0x1], 1 }

</bundles_post_ra>
